<compile_context>
chip_gen: v7x
topology: tpu7x:2x2x1
jax: 0.10.0
libtpu: 0.0.40
codegen_flags: <defaults>
</compile_context>

<pallas_src>
import jax
import jax.numpy as jnp
from jax.experimental import pallas as pl
from jax.experimental.pallas import tpu as pltpu

_LANE = 128


def _round_up(n, m):
    return (n + m - 1) // m * m


def _se_kernel(x_ref, w1_ref, w2_ref, o_ref):
    # x_ref : (TB, Cp)   w1_ref : (Cp, Hp)   w2_ref : (Hp, Cp)   o_ref : (TB, Cp)
    x = x_ref[...]  # model dtype; MXU consumes it directly.

    # AdaptiveAvgPool1d(1) over a singleton axis is the identity -> y = x.
    # Squeeze: Linear1 (no bias) -> ReLU   (f32 accumulation on the MXU)
    h = jnp.dot(x, w1_ref[...], preferred_element_type=jnp.float32)
    h = jnp.maximum(h, 0.0)

    # Excite: Linear2 (no bias) -> Sigmoid
    y = jnp.dot(h.astype(w2_ref.dtype), w2_ref[...],
                preferred_element_type=jnp.float32)
    y = jax.nn.sigmoid(y)

    # Channel-wise gate applied in the input dtype (no full-tile f32 upcast of x).
    o_ref[...] = x * y.astype(x.dtype)


def se_layer(x, fc1_weight, fc2_weight, *, block_b=None,
             target_tile_bytes=2 << 20, vmem_tile_budget_bytes=32 << 20):
    """Squeeze-and-Excitation forward.

    x          : (B, C)
    fc1_weight : (H, C)  -- PyTorch fc[0].weight (out, in), H = C // reduction
    fc2_weight : (C, H)  -- PyTorch fc[2].weight
    Returns (B, C) in x.dtype.
    """
    B, C = x.shape
    H, C1 = fc1_weight.shape
    C2, H2 = fc2_weight.shape
    if C1 != C or C2 != C or H2 != H:
        raise ValueError("weight shapes inconsistent with x")

    dtype = x.dtype
    itemsize = jnp.dtype(dtype).itemsize
    sub = max(8, 32 // itemsize)          # sublane multiple: 8 f32, 16 bf16

    # Lane-dense padding of channel / squeeze dims (zero padding is inert:
    # padded W1 columns -> ReLU(0); padded W2 columns -> sigmoid(0)=0.5 but
    # multiplied by x==0, and sliced off).
    C_pad = _round_up(C, _LANE)
    H_pad = _round_up(H, _LANE)
    needs_c_pad = (C_pad != C)

    # ---- batch-tile selection --------------------------------------------
    if block_b is not None:
        tb = int(block_b)
    else:
        tb = target_tile_bytes // (C_pad * itemsize)
    tb = max(sub, (tb // sub) * sub)
    tb = min(tb, _round_up(B, sub))

    def _footprint(t):
        tiles = 2 * (2 * t * C_pad * itemsize)            # x + out, double-buffered
        weights = 2 * (2 * C_pad * H_pad * itemsize)      # W1^T + W2^T (worst case 2 bufs)
        temps = t * (H_pad + 2 * C_pad) * 4               # f32 h, y, product temp
        return tiles + weights + temps

    while tb > sub and _footprint(tb) > vmem_tile_budget_bytes:
        tb = max(sub, ((tb // 2) // sub) * sub)

    # v7x has 2 TensorCores sharing the ("parallel") batch axis: prefer >= 2 tiles.
    if pl.cdiv(B, tb) < 2 and B > sub:
        tb = max(sub, _round_up(pl.cdiv(B, 2), sub))

    grid_len = pl.cdiv(B, tb)
    n_rows = grid_len * tb

    # ---- wrapper-side pad only when the channel dim actually needs it -----
    if needs_c_pad:
        x_p = jnp.zeros((B, C_pad), dtype).at[:, :C].set(x)
    else:
        x_p = x                                   # no extra HBM pass over x

    # Weights: pre-transposed / pre-padded once (tiny relative to x traffic).
    w1_t = jnp.zeros((C_pad, H_pad), dtype).at[:C, :H].set(
        fc1_weight.astype(dtype).T)
    w2_t = jnp.zeros((H_pad, C_pad), dtype).at[:H, :C].set(
        fc2_weight.astype(dtype).T)

    # Advisory cost estimate in terms of the padded work actually issued.
    cost = pl.CostEstimate(
        flops=4 * n_rows * C_pad * H_pad,                   # two matmuls
        transcendentals=n_rows * C_pad,                     # sigmoid
        bytes_accessed=(2 * n_rows * C_pad + 2 * C_pad * H_pad) * itemsize,
    )

    # Explicit VMEM limit: footprint + headroom, safe on v7x's 64 MiB VMEM and
    # above v5e's 16 MiB default scoped limit.
    vmem_limit = int(min(max(_footprint(tb) + (8 << 20), 24 << 20), 64 << 20))

    def _build(weight_pipeline_mode):
        wkw = {}
        if weight_pipeline_mode is not None:
            wkw = dict(pipeline_mode=weight_pipeline_mode)
        return pl.pallas_call(
            _se_kernel,
            out_shape=jax.ShapeDtypeStruct((B, C_pad), dtype),
            grid_spec=pltpu.PrefetchScalarGridSpec(
                num_scalar_prefetch=0,
                grid=(grid_len,),
                in_specs=[
                    pl.BlockSpec((tb, C_pad), lambda i: (i, 0)),           # x tile
                    pl.BlockSpec((C_pad, H_pad), lambda i: (0, 0), **wkw),  # W1^T resident
                    pl.BlockSpec((H_pad, C_pad), lambda i: (0, 0), **wkw),  # W2^T resident
                ],
                out_specs=pl.BlockSpec((tb, C_pad), lambda i: (i, 0)),
            ),
            compiler_params=pltpu.CompilerParams(
                dimension_semantics=("parallel",),     # megacore-split batch on v7x
                vmem_limit_bytes=vmem_limit),
            cost_estimate=cost,
        )

    try:
        out_p = _build(pl.Buffered(1))(x_p, w1_t, w2_t)
    except Exception:
        # Fallback if single-buffered weight blocks are rejected by this JAX build.
        out_p = _build(None)(x_p, w1_t, w2_t)

    if needs_c_pad:
        return out_p[:, :C]
    return out_p


def se_layer_ref(x, fc1_weight, fc2_weight):
    h = jnp.maximum(x @ fc1_weight.T, 0.0)
    y = jax.nn.sigmoid(h @ fc2_weight.T)
    return x * y


if __name__ == "__main__":
    B = 8
    C = 64                 # channel
    reduction = 16
    H = C // reduction     # 4

    key = jax.random.PRNGKey(0)
    kx, k1, k2 = jax.random.split(key, 3)

    x = jax.random.normal(kx, (B, C), dtype=jnp.float32)
    # PyTorch Linear weights are (out, in).
    fc1_w = jax.random.normal(k1, (H, C), dtype=jnp.float32) * 0.1  # fc[0].weight
    fc2_w = jax.random.normal(k2, (C, H), dtype=jnp.float32) * 0.1  # fc[2].weight

    out = se_layer(x, fc1_w, fc2_w)
    out = jax.block_until_ready(out)

    ref = se_layer_ref(x, fc1_w, fc2_w)
    assert out.shape == (B, C)
    assert jnp.allclose(out, ref, atol=1e-5, rtol=1e-5), "mismatch vs reference"

    print("KERNEL_OK")
</pallas_src>

<mosaic_0001>
module attributes {stable_mosaic.version = 11 : i64} {
  func.func @_se_kernel(%arg0: i32, %arg1: memref<8x128xf32, #tpu.memory_space<vmem>>, %arg2: memref<128x128xf32, #tpu.memory_space<vmem>>, %arg3: memref<128x128xf32, #tpu.memory_space<vmem>>, %arg4: memref<8x128xf32, #tpu.memory_space<vmem>>) attributes {dimension_semantics = [#tpu.dimension_semantics<parallel>], iteration_bounds = array<i64: 1>, scalar_prefetch = 0 : i64, scratch_operands = 0 : i64, tpu.core_type = #tpu.core_type<tc>, window_params = [{transform_indices = @transform_0, window_bounds = array<i64: 8, 128>}, {pipeline_mode = #tpu.pipeline_mode<synchronous>, transform_indices = @transform_1, window_bounds = array<i64: 128, 128>}, {pipeline_mode = #tpu.pipeline_mode<synchronous>, transform_indices = @transform_2, window_bounds = array<i64: 128, 128>}, {transform_indices = @transform_3, window_bounds = array<i64: 8, 128>}]} {
    %c0 = arith.constant 0 : index
    %c0_0 = arith.constant 0 : index
    %0 = vector.load %arg1[%c0, %c0_0] : memref<8x128xf32, #tpu.memory_space<vmem>>, vector<8x128xf32>
    %c0_1 = arith.constant 0 : index
    %c0_2 = arith.constant 0 : index
    %1 = vector.load %arg2[%c0_1, %c0_2] : memref<128x128xf32, #tpu.memory_space<vmem>>, vector<128x128xf32>
    %cst = arith.constant dense<0.000000e+00> : vector<8x128xf32>
    %2 = tpu.matmul %0, %1, %cst {dimension_numbers = #tpu.dot_dimension_numbers<[1], [0], [0], [1], [0, 0, 1, 1], [], []>} : vector<8x128xf32>, vector<128x128xf32>, vector<8x128xf32> -> vector<8x128xf32>
    %cst_3 = arith.constant 0.000000e+00 : f32
    %3 = vector.broadcast %cst_3 : f32 to vector<8x128xf32>
    %4 = arith.maximumf %2, %3 : vector<8x128xf32>
    %c0_4 = arith.constant 0 : index
    %c0_5 = arith.constant 0 : index
    %5 = vector.load %arg3[%c0_4, %c0_5] : memref<128x128xf32, #tpu.memory_space<vmem>>, vector<128x128xf32>
    %cst_6 = arith.constant dense<0.000000e+00> : vector<8x128xf32>
    %6 = tpu.matmul %4, %5, %cst_6 {dimension_numbers = #tpu.dot_dimension_numbers<[1], [0], [0], [1], [0, 0, 1, 1], [], []>} : vector<8x128xf32>, vector<128x128xf32>, vector<8x128xf32> -> vector<8x128xf32>
    %7 = arith.negf %6 : vector<8x128xf32>
    %8 = math.exp %7 : vector<8x128xf32>
    %cst_7 = arith.constant 1.000000e+00 : f32
    %9 = vector.broadcast %cst_7 : f32 to vector<8x128xf32>
    %10 = arith.addf %9, %8 : vector<8x128xf32>
    %11 = arith.divf %9, %10 : vector<8x128xf32>
    %12 = arith.mulf %0, %11 : vector<8x128xf32>
    %c0_8 = arith.constant 0 : index
    %c0_9 = arith.constant 0 : index
    %13 = vector.load %arg4[%c0_8, %c0_9] : memref<8x128xf32, #tpu.memory_space<vmem>>, vector<8x128xf32>
    tpu.vector_store %arg4[%c0_8, %c0_9], %12 {strides = array<i32>} : memref<8x128xf32, #tpu.memory_space<vmem>>, vector<8x128xf32>,
    return
  }
  func.func @transform_0(%arg0: i32) -> (i32, i32) {
    %c0_i32 = arith.constant 0 : i32
    %c0_i32_0 = arith.constant 0 : i32
    return %arg0, %c0_i32 : i32, i32
  }
  func.func @transform_1(%arg0: i32) -> (i32, i32) {
    %c0_i32 = arith.constant 0 : i32
    %c0_i32_0 = arith.constant 0 : i32
    %c0_i32_1 = arith.constant 0 : i32
    return %c0_i32, %c0_i32_0 : i32, i32
  }
  func.func @transform_2(%arg0: i32) -> (i32, i32) {
    %c0_i32 = arith.constant 0 : i32
    %c0_i32_0 = arith.constant 0 : i32
    %c0_i32_1 = arith.constant 0 : i32
    return %c0_i32, %c0_i32_0 : i32, i32
  }
  func.func @transform_3(%arg0: i32) -> (i32, i32) {
    %c0_i32 = arith.constant 0 : i32
    %c0_i32_0 = arith.constant 0 : i32
    return %arg0, %c0_i32 : i32, i32
  }
}

module attributes {stable_mosaic.version = 11 : i64} {
  func.func @_se_kernel(%arg0: i32, %arg1: memref<8x128xf32, #tpu.memory_space<vmem>>, %arg2: memref<128x128xf32, #tpu.memory_space<vmem>>, %arg3: memref<128x128xf32, #tpu.memory_space<vmem>>, %arg4: memref<8x128xf32, #tpu.memory_space<vmem>>) attributes {dimension_semantics = [#tpu.dimension_semantics<parallel>], iteration_bounds = array<i64: 1>, scalar_prefetch = 0 : i64, scratch_operands = 0 : i64, tpu.core_type = #tpu.core_type<tc>, window_params = [{transform_indices = @transform_0, window_bounds = array<i64: 8, 128>}, {pipeline_mode = #tpu.pipeline_mode<synchronous>, transform_indices = @transform_1, window_bounds = array<i64: 128, 128>}, {pipeline_mode = #tpu.pipeline_mode<synchronous>, transform_indices = @transform_2, window_bounds = array<i64: 128, 128>}, {transform_indices = @transform_3, window_bounds = array<i64: 8, 128>}]} {
    %c0 = arith.constant 0 : index
    %c0_0 = arith.constant 0 : index
    %0 = vector.load %arg1[%c0, %c0_0] : memref<8x128xf32, #tpu.memory_space<vmem>>, vector<8x128xf32>
    %c0_1 = arith.constant 0 : index
    %c0_2 = arith.constant 0 : index
    %1 = vector.load %arg2[%c0_1, %c0_2] : memref<128x128xf32, #tpu.memory_space<vmem>>, vector<128x128xf32>
    %cst = arith.constant dense<0.000000e+00> : vector<8x128xf32>
    %2 = tpu.matmul %0, %1, %cst {dimension_numbers = #tpu.dot_dimension_numbers<[1], [0], [0], [1], [0, 0, 1, 1], [], []>} : vector<8x128xf32>, vector<128x128xf32>, vector<8x128xf32> -> vector<8x128xf32>
    %cst_3 = arith.constant 0.000000e+00 : f32
    %3 = vector.broadcast %cst_3 : f32 to vector<8x128xf32>
    %4 = arith.maximumf %2, %3 : vector<8x128xf32>
    %c0_4 = arith.constant 0 : index
    %c0_5 = arith.constant 0 : index
    %5 = vector.load %arg3[%c0_4, %c0_5] : memref<128x128xf32, #tpu.memory_space<vmem>>, vector<128x128xf32>
    %cst_6 = arith.constant dense<0.000000e+00> : vector<8x128xf32>
    %6 = tpu.matmul %4, %5, %cst_6 {dimension_numbers = #tpu.dot_dimension_numbers<[1], [0], [0], [1], [0, 0, 1, 1], [], []>} : vector<8x128xf32>, vector<128x128xf32>, vector<8x128xf32> -> vector<8x128xf32>
    %7 = arith.negf %6 : vector<8x128xf32>
    %8 = math.exp %7 : vector<8x128xf32>
    %cst_7 = arith.constant 1.000000e+00 : f32
    %9 = vector.broadcast %cst_7 : f32 to vector<8x128xf32>
    %10 = arith.addf %9, %8 : vector<8x128xf32>
    %11 = arith.divf %9, %10 : vector<8x128xf32>
    %12 = arith.mulf %0, %11 : vector<8x128xf32>
    %c0_8 = arith.constant 0 : index
    %c0_9 = arith.constant 0 : index
    %13 = vector.load %arg4[%c0_8, %c0_9] : memref<8x128xf32, #tpu.memory_space<vmem>>, vector<8x128xf32>
    tpu.vector_store %arg4[%c0_8, %c0_9], %12 {strides = array<i32>} : memref<8x128xf32, #tpu.memory_space<vmem>>, vector<8x128xf32>,
    return
  }
  func.func @transform_0(%arg0: i32) -> (i32, i32) {
    %c0_i32 = arith.constant 0 : i32
    %c0_i32_0 = arith.constant 0 : i32
    return %arg0, %c0_i32 : i32, i32
  }
  func.func @transform_1(%arg0: i32) -> (i32, i32) {
    %c0_i32 = arith.constant 0 : i32
    %c0_i32_0 = arith.constant 0 : i32
    %c0_i32_1 = arith.constant 0 : i32
    return %c0_i32, %c0_i32_0 : i32, i32
  }
  func.func @transform_2(%arg0: i32) -> (i32, i32) {
    %c0_i32 = arith.constant 0 : i32
    %c0_i32_0 = arith.constant 0 : i32
    %c0_i32_1 = arith.constant 0 : i32
    return %c0_i32, %c0_i32_0 : i32, i32
  }
  func.func @transform_3(%arg0: i32) -> (i32, i32) {
    %c0_i32 = arith.constant 0 : i32
    %c0_i32_0 = arith.constant 0 : i32
    return %arg0, %c0_i32 : i32, i32
  }
}

</mosaic_0001>

<bundles_post_ra>
// kernel: tpu_custom_call.1
= control target key start
LH: loop header
LB: loop body
LE: loop exit
PB: predicated region body
PF: predicated region fallthrough
CT: control target
= control target key end

     0   :  { %8 = vsyncpa [#allocation3], 0  ;;  %s611_s0 = inlined_call_operand.hbm [shape: f32[8,128], index: 0, kind: input, shape index: {}]   ;;  %s612_s1 = inlined_call_operand.hbm [shape: f32[128,128], index: 1, kind: input, shape index: {}]   ;;  %s613_s2 = inlined_call_operand.hbm [shape: f32[128,128], index: 2, kind: input, shape index: {}]   ;;  %s614_s3 = inlined_call_operand.hbm [shape: f32[8,128], index: 3, kind: output, shape index: {}]  }
   0x1   :  { %9 = vsyncpa [#allocation6], 0 }
   0x2   :  { %10 = vsyncpa [#allocation4], 0  ;;  %s512_s12 = smov [#allocation5]   ;;  %s418_s16 = scalar_lea.hbm %s612_s1, 2048 }
   0x3   :  { %s26_s13 = sshll.u32 %s512_s12, 4  ;;  %p419_p0 = scmp.ne.s32.totalorder %s612_s1, %s418_s16  ;;  %s27_s13 = int_to_ptr.vmem [resolvable:$true] %s26_s13 }
   0x4   :  { %p422_p1 = scmp.lt.u32.totalorder %s418_s16, %s612_s1 }
   0x6   :  { %p424_p2 = pnand %p422_p1, %p419_p0 }
   0x8   :  { %427 = shalt.err (!%p424_p2)
}
   0x9   :  { %s428_s21 = scalar_lea.vmem %s27_s13, 2048  ;;  %p433_p4 = scmp.lt.s32.totalorder %s27_s13, %s27_s13 }
   0xa   :  { %p429_p3 = scmp.ne.s32.totalorder %s27_s13, %s428_s21  ;;  %p434_p5 = scmp.lt.s32.totalorder %s428_s21, %s428_s21 }
   0xc   :  { %p435_p6 = por %p434_p5, %p433_p4 }
   0xe   :  { %p436_p7 = pnand %p435_p6, %p429_p3 }
  0x10   :  { %439 = shalt.err (!%p436_p7)
}
  0x11   :  { %s513_s22 = smov 128   ;;  %s514_s23 = smov 8  }
  0x12   :  { %32 = dma.hbm_to_vmem [thread:$0]  %s612_s1, 2048, %s27_s13, [#allocation6], %s513_s22, %s513_s22, %s514_s23  }
  0x13   :  { %s515_s26 = smov [#allocation2]   ;;  %s516_s28 = smov [#allocation7]  }
  0x14   :  { %s17_s27 = sshll.u32 %s515_s26, 4  ;;  %s38_s29 = sshll.u32 %s516_s28, 4  ;;  %s18_s27 = int_to_ptr.vmem [resolvable:$true] %s17_s27  ;;  %s39_s29 = int_to_ptr.vmem [resolvable:$true] %s38_s29 }
  0x15   :  { %s440_s5 = scalar_lea.hbm %s611_s0, 128 }
  0x16   :  { %p441_p8 = scmp.ne.s32.totalorder %s611_s0, %s440_s5  ;;  %p444_p9 = scmp.lt.u32.totalorder %s440_s5, %s611_s0 }
  0x18   :  { %p446_p10 = pnand %p444_p9, %p441_p8 }
  0x1a   :  { %449 = shalt.err (!%p446_p10)
}
  0x1b   :  { %s450_s1 = scalar_lea.vmem %s18_s27, 128  ;;  %p455_p12 = scmp.lt.s32.totalorder %s18_s27, %s18_s27 }
  0x1c   :  { %p451_p11 = scmp.ne.s32.totalorder %s18_s27, %s450_s1  ;;  %p456_p13 = scmp.lt.s32.totalorder %s450_s1, %s450_s1 }
  0x1e   :  { %p457_p0 = por %p456_p13, %p455_p12 }
  0x20   :  { %p458_p1 = pnand %p457_p0, %p451_p11 }
  0x22   :  { %461 = shalt.err (!%p458_p1)
}
  0x23   :  { %20 = dma.hbm_to_vmem [thread:$0]  %s611_s0, 128, %s18_s27, [#allocation3]  }
  0x24   :  { %s462_s14 = scalar_lea.hbm %s613_s2, 2048 }
  0x25   :  { %p463_p2 = scmp.ne.s32.totalorder %s613_s2, %s462_s14  ;;  %p466_p3 = scmp.lt.u32.totalorder %s462_s14, %s613_s2 }
  0x27   :  { %p468_p4 = pnand %p466_p3, %p463_p2 }
  0x29   :  { %471 = shalt.err (!%p468_p4)
}
  0x2a   :  { %s472_s19 = scalar_lea.vmem %s39_s29, 2048  ;;  %p477_p6 = scmp.lt.s32.totalorder %s39_s29, %s39_s29 }
  0x2b   :  { %p473_p5 = scmp.ne.s32.totalorder %s39_s29, %s472_s19  ;;  %p478_p7 = scmp.lt.s32.totalorder %s472_s19, %s472_s19 }
  0x2d   :  { %p479_p8 = por %p478_p7, %p477_p6 }
  0x2f   :  { %p480_p9 = pnand %p479_p8, %p473_p5 }
  0x31   :  { %483 = shalt.err (!%p480_p9)
}
  0x32   :  { %44 = dma.hbm_to_vmem [thread:$0]  %s613_s2, 2048, %s39_s29, [#allocation6], %s513_s22, %s513_s22, %s514_s23  }
  0x33   :  { %506 = dma.done.wait [#allocation3], 128  }
  0x34   :  { %507 = vsyncadd [#allocation3], 4294967168 }
  0x35   :  { %508 = dma.done.wait [#allocation6], 4096  }
  0x36   :  { %509 = vsyncadd [#allocation6], 4294963200  ;;  %v517_v0 = vmov 0.0|0.0   ;;  %vm518_vm0 = vmmov 0   ;;  %v519_v1 = vmov 0.0   ;;  %v55_v2 = vld [vmem:[#allocation5] sm:$0xff] }
  0x37   :  { %357 = vmatprep.subr.bf16.mxu0 %v517_v0  ;;  %319 = vmatprep.mubr.msk.f32.mxu0 %vm518_vm0, %v519_v1  ;;  %v56_v3 = vld [vmem:[#allocation5 + $0x8] sm:$0xff]  ;;  %v57_v4 = vld [vmem:[#allocation5 + $0x10] sm:$0xff]  ;;  %v58_v6 = vld [vmem:[#allocation5 + $0x18] sm:$0xff]  ;;  %s520_s2 = smov [#allocation8]  }
  0x38   :  { %381 = vmatprep.subr.bf16.mxu1 %v517_v0  ;;  %354 = vmatprep.mubr.msk.f32.mxu1 %vm518_vm0, %v519_v1  ;;  %v358_v5 = vpack.c.bf16 %v56_v3, %v55_v2  ;;  %v361_v7 = vpack.c.bf16 %v58_v6, %v57_v4  ;;  %v59_v8 = vld [vmem:[#allocation5 + $0x20] sm:$0xff]  ;;  %v60_v9 = vld [vmem:[#allocation5 + $0x28] sm:$0xff]  ;;  %v144_v12 = vld [vmem:[#allocation7 + $0x10] sm:$0xff]  ;;  %s242_s21 = sshll.u32 %s520_s2, 4  ;;  %s243_s21 = int_to_ptr.vmem [resolvable:$true] %s242_s21 }
  0x39   :  { %v142_v10 = vld [vmem:[#allocation7] sm:$0xff]  ;;  %v143_v11 = vld [vmem:[#allocation7 + $0x8] sm:$0xff]  ;;  %v145_v13 = vld [vmem:[#allocation7 + $0x18] sm:$0xff]  ;;  %v364_v14 = vpack.c.bf16 %v60_v9, %v59_v8  ;;  %s484_s22 = scalar_lea.vmem %s243_s21, 128  ;;  %p489_p11 = scmp.lt.s32.totalorder %s243_s21, %s243_s21 }
  0x3a   :  { %359 = vmatpush3.bf16.msra.mxu0 %v358_v5  ;;  %v382_v15 = vpack.c.bf16 %v143_v11, %v142_v10  ;;  %v61_v16 = vld [vmem:[#allocation5 + $0x30] sm:$0xff]  ;;  %v62_v17 = vld [vmem:[#allocation5 + $0x38] sm:$0xff]  ;;  %v385_v18 = vpack.c.bf16 %v145_v13, %v144_v12  ;;  %v146_v19 = vld [vmem:[#allocation7 + $0x20] sm:$0xff]  ;;  %p485_p10 = scmp.ne.s32.totalorder %s243_s21, %s484_s22  ;;  %p490_p12 = scmp.lt.s32.totalorder %s484_s22, %s484_s22 }
  0x3b   :  { %360 = vmatprep.subr.bf16.mxu0 %v517_v0  ;;  %v147_v20 = vld [vmem:[#allocation7 + $0x28] sm:$0xff]  ;;  %v367_v21 = vpack.c.bf16 %v62_v17, %v61_v16  ;;  %v63_v22 = vld [vmem:[#allocation5 + $0x40] sm:$0xff]  ;;  %v148_v25 = vld [vmem:[#allocation7 + $0x30] sm:$0xff] }
  0x3c   :  { %383 = vmatpush3.bf16.msra.mxu1 %v382_v15  ;;  %v64_v23 = vld [vmem:[#allocation5 + $0x48] sm:$0xff]  ;;  %v388_v24 = vpack.c.bf16 %v147_v20, %v146_v19  ;;  %v149_v26 = vld [vmem:[#allocation7 + $0x38] sm:$0xff]  ;;  %v65_v28 = vld [vmem:[#allocation5 + $0x50] sm:$0xff]  ;;  %p491_p13 = por %p490_p12, %p489_p11 }
  0x3d   :  { %384 = vmatprep.subr.bf16.mxu1 %v517_v0  ;;  %v370_v27 = vpack.c.bf16 %v64_v23, %v63_v22  ;;  %v66_v29 = vld [vmem:[#allocation5 + $0x58] sm:$0xff]  ;;  %v391_v30 = vpack.c.bf16 %v149_v26, %v148_v25  ;;  %v150_v31 = vld [vmem:[#allocation7 + $0x40] sm:$0xff]  ;;  %v151_v32 = vld [vmem:[#allocation7 + $0x48] sm:$0xff] }
  0x3e   :  { %362 = vmatpush3.bf16.msra.mxu0 %v361_v7  ;;  %v373_v33 = vpack.c.bf16 %v66_v29, %v65_v28  ;;  %v67_v34 = vld [vmem:[#allocation5 + $0x60] sm:$0xff]  ;;  %v68_v35 = vld [vmem:[#allocation5 + $0x68] sm:$0xff]  ;;  %v394_v36 = vpack.c.bf16 %v151_v32, %v150_v31  ;;  %v152_v37 = vld [vmem:[#allocation7 + $0x50] sm:$0xff]  ;;  %p492_p0 = pnand %p491_p13, %p485_p10 }
  0x3f   :  { %363 = vmatprep.subr.bf16.mxu0 %v517_v0  ;;  %v153_v38 = vld [vmem:[#allocation7 + $0x58] sm:$0xff]  ;;  %v376_v39 = vpack.c.bf16 %v68_v35, %v67_v34  ;;  %v69_v40 = vld [vmem:[#allocation5 + $0x70] sm:$0xff]  ;;  %v154_v43 = vld [vmem:[#allocation7 + $0x60] sm:$0xff] }
  0x40   :  { %386 = vmatpush3.bf16.msra.mxu1 %v385_v18  ;;  %v70_v41 = vld [vmem:[#allocation5 + $0x78] sm:$0xff]  ;;  %v397_v42 = vpack.c.bf16 %v153_v38, %v152_v37  ;;  %v155_v44 = vld [vmem:[#allocation7 + $0x68] sm:$0xff]  ;;  %v156_v48 = vld [vmem:[#allocation7 + $0x70] sm:$0xff] }
  0x41   :  { %387 = vmatprep.subr.bf16.mxu1 %v517_v0  ;;  %v379_v45 = vpack.c.bf16 %v70_v41, %v69_v40  ;;  %v400_v46 = vpack.c.bf16 %v155_v44, %v154_v43  ;;  %v54_v47 = vld [vmem:[#allocation2] sm:$0xff] }
  0x42   :  { %365 = vmatpush3.bf16.msra.mxu0 %v364_v14  ;;  %v157_v49 = vld [vmem:[#allocation7 + $0x78] sm:$0xff] }
  0x43   :  { %366 = vmatprep.subr.bf16.mxu0 %v517_v0  ;;  %v403_v50 = vpack.c.bf16 %v157_v49, %v156_v48 }
  0x44   :  { %389 = vmatpush3.bf16.msra.mxu1 %v388_v24 }
  0x45   :  { %390 = vmatprep.subr.bf16.mxu1 %v517_v0 }
  0x46   :  { %368 = vmatpush3.bf16.msra.mxu0 %v367_v21 }
  0x47   :  { %369 = vmatprep.subr.bf16.mxu0 %v517_v0 }
  0x48   :  { %392 = vmatpush3.bf16.msra.mxu1 %v391_v30 }
  0x49   :  { %393 = vmatprep.subr.bf16.mxu1 %v517_v0 }
  0x4a   :  { %371 = vmatpush3.bf16.msra.mxu0 %v370_v27 }
  0x4b   :  { %372 = vmatprep.subr.bf16.mxu0 %v517_v0 }
  0x4c   :  { %395 = vmatpush3.bf16.msra.mxu1 %v394_v36 }
  0x4d   :  { %396 = vmatprep.subr.bf16.mxu1 %v517_v0 }
  0x4e   :  { %374 = vmatpush3.bf16.msra.mxu0 %v373_v33 }
  0x4f   :  { %375 = vmatprep.subr.bf16.mxu0 %v517_v0 }
  0x50   :  { %398 = vmatpush3.bf16.msra.mxu1 %v397_v42 }
  0x51   :  { %399 = vmatprep.subr.bf16.mxu1 %v517_v0 }
  0x52   :  { %377 = vmatpush3.bf16.msra.mxu0 %v376_v39 }
  0x53   :  { %378 = vmatprep.subr.bf16.mxu0 %v517_v0 }
  0x54   :  { %401 = vmatpush3.bf16.msra.mxu1 %v400_v46 }
  0x55   :  { %402 = vmatprep.subr.bf16.mxu1 %v517_v0 }
  0x56   :  { %380 = vmatpush3.bf16.msra.mxu0 %v379_v45 }
  0x58   :  { %404 = vmatpush3.bf16.msra.mxu1 %v403_v50 }
  0x59   :  { %320 = vmatmul.mubr.f32.vlgmr.msra.gmra.mrb[0].mxu0 %v54_v47 }
 0x12c   :  { %v137_v51 = vpop.f32.mrb[0].mxu0 }
 0x12d   :  { %v141_v52 = vmax.f32 %v137_v51, 0.0  ;;  %v321_v53 = vpop.f32.mrb[1].mxu0 }
 0x12f   :  { %355 = vmatmul.mubr.f32.vlgmr.msra.gmra.mrb[0].mxu1 %v141_v52 }
 0x202   :  { %v224_v54 = vpop.f32.mrb[0].mxu1 }
 0x203   :  { %v252_v55 = vmul.f32 -1.442695, %v224_v54  ;;  %v356_v56 = vpop.f32.mrb[1].mxu1 }
 0x205   :  { %414 = vpow2.f32 %v252_v55 }
 0x20f   :  { %v415_v57 = vpop.eup %414 }
 0x210   :  { %v231_v58 = vadd.f32 1.0, %v415_v57 }
 0x212   :  { %416 = vrcp.f32 %v231_v58 }
 0x21c   :  { %v417_v59 = vpop.eup %416 }
 0x21d   :  { %v234_v60 = vmul.f32 %v417_v59, %v54_v47 }
 0x21f   :  { %235 = vst [vmem:[#allocation8] sm:$0xff] %v234_v60 }
 0x220   :  { %495 = shalt.err (!%p492_p0)
}
 0x221   :  { %s496_s25 = scalar_lea.hbm %s614_s3, 128 }
 0x222   :  { %p497_p1 = scmp.ne.s32.totalorder %s614_s3, %s496_s25  ;;  %p500_p2 = scmp.lt.u32.totalorder %s496_s25, %s614_s3 }
 0x224   :  { %p502_p3 = pnand %p500_p2, %p497_p1 }
 0x226   :  { %505 = shalt.err (!%p502_p3)
}
 0x227   :  { %245 = dma.vmem_to_hbm [thread:$0]  %s243_s21, 128, %s614_s3, [#allocation4]  }
 0x228   :  { %510 = dma.done.wait [#allocation4], 128  }
 0x229   :  { %511 = vsyncadd [#allocation4], 4294967168 }
 0x22a   :  { %249 = vsyncpa [#allocation3], 1 }
 0x22b   :  { %250 = vsyncpa [#allocation6], 1 }
 0x22c   :  { %251 = vsyncpa [#allocation4], 1 }

// kernel: tpu_custom_call.1
= control target key start
LH: loop header
LB: loop body
LE: loop exit
PB: predicated region body
PF: predicated region fallthrough
CT: control target
= control target key end

     0   :  { %8 = vsyncpa [#allocation3], 0  ;;  %s611_s0 = inlined_call_operand.hbm [shape: f32[8,128], index: 0, kind: input, shape index: {}]   ;;  %s612_s1 = inlined_call_operand.hbm [shape: f32[128,128], index: 1, kind: input, shape index: {}]   ;;  %s613_s2 = inlined_call_operand.hbm [shape: f32[128,128], index: 2, kind: input, shape index: {}]   ;;  %s614_s3 = inlined_call_operand.hbm [shape: f32[8,128], index: 3, kind: output, shape index: {}]  }
   0x1   :  { %9 = vsyncpa [#allocation6], 0 }
   0x2   :  { %10 = vsyncpa [#allocation4], 0  ;;  %s512_s12 = smov [#allocation5]   ;;  %s418_s16 = scalar_lea.hbm %s612_s1, 2048 }
   0x3   :  { %s26_s13 = sshll.u32 %s512_s12, 4  ;;  %p419_p0 = scmp.ne.s32.totalorder %s612_s1, %s418_s16  ;;  %s27_s13 = int_to_ptr.vmem [resolvable:$true] %s26_s13 }
   0x4   :  { %p422_p1 = scmp.lt.u32.totalorder %s418_s16, %s612_s1 }
   0x6   :  { %p424_p2 = pnand %p422_p1, %p419_p0 }
   0x8   :  { %427 = shalt.err (!%p424_p2)
}
   0x9   :  { %s428_s21 = scalar_lea.vmem %s27_s13, 2048  ;;  %p433_p4 = scmp.lt.s32.totalorder %s27_s13, %s27_s13 }
   0xa   :  { %p429_p3 = scmp.ne.s32.totalorder %s27_s13, %s428_s21  ;;  %p434_p5 = scmp.lt.s32.totalorder %s428_s21, %s428_s21 }
   0xc   :  { %p435_p6 = por %p434_p5, %p433_p4 }
   0xe   :  { %p436_p7 = pnand %p435_p6, %p429_p3 }
  0x10   :  { %439 = shalt.err (!%p436_p7)
}
  0x11   :  { %s513_s22 = smov 128   ;;  %s514_s23 = smov 8  }
  0x12   :  { %32 = dma.hbm_to_vmem [thread:$0]  %s612_s1, 2048, %s27_s13, [#allocation6], %s513_s22, %s513_s22, %s514_s23  }
  0x13   :  { %s515_s26 = smov [#allocation2]   ;;  %s516_s28 = smov [#allocation7]  }
  0x14   :  { %s17_s27 = sshll.u32 %s515_s26, 4  ;;  %s38_s29 = sshll.u32 %s516_s28, 4  ;;  %s18_s27 = int_to_ptr.vmem [resolvable:$true] %s17_s27  ;;  %s39_s29 = int_to_ptr.vmem [resolvable:$true] %s38_s29 }
  0x15   :  { %s440_s5 = scalar_lea.hbm %s611_s0, 128 }
  0x16   :  { %p441_p8 = scmp.ne.s32.totalorder %s611_s0, %s440_s5  ;;  %p444_p9 = scmp.lt.u32.totalorder %s440_s5, %s611_s0 }
  0x18   :  { %p446_p10 = pnand %p444_p9, %p441_p8 }
  0x1a   :  { %449 = shalt.err (!%p446_p10)
}
  0x1b   :  { %s450_s1 = scalar_lea.vmem %s18_s27, 128  ;;  %p455_p12 = scmp.lt.s32.totalorder %s18_s27, %s18_s27 }
  0x1c   :  { %p451_p11 = scmp.ne.s32.totalorder %s18_s27, %s450_s1  ;;  %p456_p13 = scmp.lt.s32.totalorder %s450_s1, %s450_s1 }
  0x1e   :  { %p457_p0 = por %p456_p13, %p455_p12 }
  0x20   :  { %p458_p1 = pnand %p457_p0, %p451_p11 }
  0x22   :  { %461 = shalt.err (!%p458_p1)
}
  0x23   :  { %20 = dma.hbm_to_vmem [thread:$0]  %s611_s0, 128, %s18_s27, [#allocation3]  }
  0x24   :  { %s462_s14 = scalar_lea.hbm %s613_s2, 2048 }
  0x25   :  { %p463_p2 = scmp.ne.s32.totalorder %s613_s2, %s462_s14  ;;  %p466_p3 = scmp.lt.u32.totalorder %s462_s14, %s613_s2 }
  0x27   :  { %p468_p4 = pnand %p466_p3, %p463_p2 }
  0x29   :  { %471 = shalt.err (!%p468_p4)
}
  0x2a   :  { %s472_s19 = scalar_lea.vmem %s39_s29, 2048  ;;  %p477_p6 = scmp.lt.s32.totalorder %s39_s29, %s39_s29 }
  0x2b   :  { %p473_p5 = scmp.ne.s32.totalorder %s39_s29, %s472_s19  ;;  %p478_p7 = scmp.lt.s32.totalorder %s472_s19, %s472_s19 }
  0x2d   :  { %p479_p8 = por %p478_p7, %p477_p6 }
  0x2f   :  { %p480_p9 = pnand %p479_p8, %p473_p5 }
  0x31   :  { %483 = shalt.err (!%p480_p9)
}
  0x32   :  { %44 = dma.hbm_to_vmem [thread:$0]  %s613_s2, 2048, %s39_s29, [#allocation6], %s513_s22, %s513_s22, %s514_s23  }
  0x33   :  { %506 = dma.done.wait [#allocation3], 128  }
  0x34   :  { %507 = vsyncadd [#allocation3], 4294967168 }
  0x35   :  { %508 = dma.done.wait [#allocation6], 4096  }
  0x36   :  { %509 = vsyncadd [#allocation6], 4294963200  ;;  %v517_v0 = vmov 0.0|0.0   ;;  %vm518_vm0 = vmmov 0   ;;  %v519_v1 = vmov 0.0   ;;  %v55_v2 = vld [vmem:[#allocation5] sm:$0xff] }
  0x37   :  { %357 = vmatprep.subr.bf16.mxu0 %v517_v0  ;;  %319 = vmatprep.mubr.msk.f32.mxu0 %vm518_vm0, %v519_v1  ;;  %v56_v3 = vld [vmem:[#allocation5 + $0x8] sm:$0xff]  ;;  %v57_v4 = vld [vmem:[#allocation5 + $0x10] sm:$0xff]  ;;  %v58_v6 = vld [vmem:[#allocation5 + $0x18] sm:$0xff]  ;;  %s520_s2 = smov [#allocation8]  }
  0x38   :  { %381 = vmatprep.subr.bf16.mxu1 %v517_v0  ;;  %354 = vmatprep.mubr.msk.f32.mxu1 %vm518_vm0, %v519_v1  ;;  %v358_v5 = vpack.c.bf16 %v56_v3, %v55_v2  ;;  %v361_v7 = vpack.c.bf16 %v58_v6, %v57_v4  ;;  %v59_v8 = vld [vmem:[#allocation5 + $0x20] sm:$0xff]  ;;  %v60_v9 = vld [vmem:[#allocation5 + $0x28] sm:$0xff]  ;;  %v144_v12 = vld [vmem:[#allocation7 + $0x10] sm:$0xff]  ;;  %s242_s21 = sshll.u32 %s520_s2, 4  ;;  %s243_s21 = int_to_ptr.vmem [resolvable:$true] %s242_s21 }
  0x39   :  { %v142_v10 = vld [vmem:[#allocation7] sm:$0xff]  ;;  %v143_v11 = vld [vmem:[#allocation7 + $0x8] sm:$0xff]  ;;  %v145_v13 = vld [vmem:[#allocation7 + $0x18] sm:$0xff]  ;;  %v364_v14 = vpack.c.bf16 %v60_v9, %v59_v8  ;;  %s484_s22 = scalar_lea.vmem %s243_s21, 128  ;;  %p489_p11 = scmp.lt.s32.totalorder %s243_s21, %s243_s21 }
  0x3a   :  { %359 = vmatpush3.bf16.msra.mxu0 %v358_v5  ;;  %v382_v15 = vpack.c.bf16 %v143_v11, %v142_v10  ;;  %v61_v16 = vld [vmem:[#allocation5 + $0x30] sm:$0xff]  ;;  %v62_v17 = vld [vmem:[#allocation5 + $0x38] sm:$0xff]  ;;  %v385_v18 = vpack.c.bf16 %v145_v13, %v144_v12  ;;  %v146_v19 = vld [vmem:[#allocation7 + $0x20] sm:$0xff]  ;;  %p485_p10 = scmp.ne.s32.totalorder %s243_s21, %s484_s22  ;;  %p490_p12 = scmp.lt.s32.totalorder %s484_s22, %s484_s22 }
  0x3b   :  { %360 = vmatprep.subr.bf16.mxu0 %v517_v0  ;;  %v147_v20 = vld [vmem:[#allocation7 + $0x28] sm:$0xff]  ;;  %v367_v21 = vpack.c.bf16 %v62_v17, %v61_v16  ;;  %v63_v22 = vld [vmem:[#allocation5 + $0x40] sm:$0xff]  ;;  %v148_v25 = vld [vmem:[#allocation7 + $0x30] sm:$0xff] }
  0x3c   :  { %383 = vmatpush3.bf16.msra.mxu1 %v382_v15  ;;  %v64_v23 = vld [vmem:[#allocation5 + $0x48] sm:$0xff]  ;;  %v388_v24 = vpack.c.bf16 %v147_v20, %v146_v19  ;;  %v149_v26 = vld [vmem:[#allocation7 + $0x38] sm:$0xff]  ;;  %v65_v28 = vld [vmem:[#allocation5 + $0x50] sm:$0xff]  ;;  %p491_p13 = por %p490_p12, %p489_p11 }
  0x3d   :  { %384 = vmatprep.subr.bf16.mxu1 %v517_v0  ;;  %v370_v27 = vpack.c.bf16 %v64_v23, %v63_v22  ;;  %v66_v29 = vld [vmem:[#allocation5 + $0x58] sm:$0xff]  ;;  %v391_v30 = vpack.c.bf16 %v149_v26, %v148_v25  ;;  %v150_v31 = vld [vmem:[#allocation7 + $0x40] sm:$0xff]  ;;  %v151_v32 = vld [vmem:[#allocation7 + $0x48] sm:$0xff] }
  0x3e   :  { %362 = vmatpush3.bf16.msra.mxu0 %v361_v7  ;;  %v373_v33 = vpack.c.bf16 %v66_v29, %v65_v28  ;;  %v67_v34 = vld [vmem:[#allocation5 + $0x60] sm:$0xff]  ;;  %v68_v35 = vld [vmem:[#allocation5 + $0x68] sm:$0xff]  ;;  %v394_v36 = vpack.c.bf16 %v151_v32, %v150_v31  ;;  %v152_v37 = vld [vmem:[#allocation7 + $0x50] sm:$0xff]  ;;  %p492_p0 = pnand %p491_p13, %p485_p10 }
  0x3f   :  { %363 = vmatprep.subr.bf16.mxu0 %v517_v0  ;;  %v153_v38 = vld [vmem:[#allocation7 + $0x58] sm:$0xff]  ;;  %v376_v39 = vpack.c.bf16 %v68_v35, %v67_v34  ;;  %v69_v40 = vld [vmem:[#allocation5 + $0x70] sm:$0xff]  ;;  %v154_v43 = vld [vmem:[#allocation7 + $0x60] sm:$0xff] }
  0x40   :  { %386 = vmatpush3.bf16.msra.mxu1 %v385_v18  ;;  %v70_v41 = vld [vmem:[#allocation5 + $0x78] sm:$0xff]  ;;  %v397_v42 = vpack.c.bf16 %v153_v38, %v152_v37  ;;  %v155_v44 = vld [vmem:[#allocation7 + $0x68] sm:$0xff]  ;;  %v156_v48 = vld [vmem:[#allocation7 + $0x70] sm:$0xff] }
  0x41   :  { %387 = vmatprep.subr.bf16.mxu1 %v517_v0  ;;  %v379_v45 = vpack.c.bf16 %v70_v41, %v69_v40  ;;  %v400_v46 = vpack.c.bf16 %v155_v44, %v154_v43  ;;  %v54_v47 = vld [vmem:[#allocation2] sm:$0xff] }
  0x42   :  { %365 = vmatpush3.bf16.msra.mxu0 %v364_v14  ;;  %v157_v49 = vld [vmem:[#allocation7 + $0x78] sm:$0xff] }
  0x43   :  { %366 = vmatprep.subr.bf16.mxu0 %v517_v0  ;;  %v403_v50 = vpack.c.bf16 %v157_v49, %v156_v48 }
  0x44   :  { %389 = vmatpush3.bf16.msra.mxu1 %v388_v24 }
  0x45   :  { %390 = vmatprep.subr.bf16.mxu1 %v517_v0 }
  0x46   :  { %368 = vmatpush3.bf16.msra.mxu0 %v367_v21 }
  0x47   :  { %369 = vmatprep.subr.bf16.mxu0 %v517_v0 }
  0x48   :  { %392 = vmatpush3.bf16.msra.mxu1 %v391_v30 }
  0x49   :  { %393 = vmatprep.subr.bf16.mxu1 %v517_v0 }
  0x4a   :  { %371 = vmatpush3.bf16.msra.mxu0 %v370_v27 }
  0x4b   :  { %372 = vmatprep.subr.bf16.mxu0 %v517_v0 }
  0x4c   :  { %395 = vmatpush3.bf16.msra.mxu1 %v394_v36 }
  0x4d   :  { %396 = vmatprep.subr.bf16.mxu1 %v517_v0 }
  0x4e   :  { %374 = vmatpush3.bf16.msra.mxu0 %v373_v33 }
  0x4f   :  { %375 = vmatprep.subr.bf16.mxu0 %v517_v0 }
  0x50   :  { %398 = vmatpush3.bf16.msra.mxu1 %v397_v42 }
  0x51   :  { %399 = vmatprep.subr.bf16.mxu1 %v517_v0 }
  0x52   :  { %377 = vmatpush3.bf16.msra.mxu0 %v376_v39 }
  0x53   :  { %378 = vmatprep.subr.bf16.mxu0 %v517_v0 }
  0x54   :  { %401 = vmatpush3.bf16.msra.mxu1 %v400_v46 }
  0x55   :  { %402 = vmatprep.subr.bf16.mxu1 %v517_v0 }
  0x56   :  { %380 = vmatpush3.bf16.msra.mxu0 %v379_v45 }
  0x58   :  { %404 = vmatpush3.bf16.msra.mxu1 %v403_v50 }
  0x59   :  { %320 = vmatmul.mubr.f32.vlgmr.msra.gmra.mrb[0].mxu0 %v54_v47 }
 0x12c   :  { %v137_v51 = vpop.f32.mrb[0].mxu0 }
 0x12d   :  { %v141_v52 = vmax.f32 %v137_v51, 0.0  ;;  %v321_v53 = vpop.f32.mrb[1].mxu0 }
 0x12f   :  { %355 = vmatmul.mubr.f32.vlgmr.msra.gmra.mrb[0].mxu1 %v141_v52 }
 0x202   :  { %v224_v54 = vpop.f32.mrb[0].mxu1 }
 0x203   :  { %v252_v55 = vmul.f32 -1.442695, %v224_v54  ;;  %v356_v56 = vpop.f32.mrb[1].mxu1 }
 0x205   :  { %414 = vpow2.f32 %v252_v55 }
 0x20f   :  { %v415_v57 = vpop.eup %414 }
 0x210   :  { %v231_v58 = vadd.f32 1.0, %v415_v57 }
 0x212   :  { %416 = vrcp.f32 %v231_v58 }
 0x21c   :  { %v417_v59 = vpop.eup %416 }
 0x21d   :  { %v234_v60 = vmul.f32 %v417_v59, %v54_v47 }
 0x21f   :  { %235 = vst [vmem:[#allocation8] sm:$0xff] %v234_v60 }
 0x220   :  { %495 = shalt.err (!%p492_p0)
}
 0x221   :  { %s496_s25 = scalar_lea.hbm %s614_s3, 128 }
 0x222   :  { %p497_p1 = scmp.ne.s32.totalorder %s614_s3, %s496_s25  ;;  %p500_p2 = scmp.lt.u32.totalorder %s496_s25, %s614_s3 }
 0x224   :  { %p502_p3 = pnand %p500_p2, %p497_p1 }
 0x226   :  { %505 = shalt.err (!%p502_p3)
}
 0x227   :  { %245 = dma.vmem_to_hbm [thread:$0]  %s243_s21, 128, %s614_s3, [#allocation4]  }
 0x228   :  { %510 = dma.done.wait [#allocation4], 128  }
 0x229   :  { %511 = vsyncadd [#allocation4], 4294967168 }
 0x22a   :  { %249 = vsyncpa [#allocation3], 1 }
 0x22b   :  { %250 = vsyncpa [#allocation6], 1 }
 0x22c   :  { %251 = vsyncpa [#allocation4], 1 }

</bundles_post_ra>
